<compile_context>
chip_gen: v6e
topology: v6e:2x2x1
jax: 0.10.0
libtpu: 0.0.40
codegen_flags: <defaults>
</compile_context>

<pallas_src>
import functools
import math

import jax
import jax.numpy as jnp
from jax.experimental import pallas as pl
from jax.experimental.pallas import tpu as pltpu


_TARGET_BLOCK_BYTES_INT = 4 * 1024 * 1024    # integer-shift path: few temporaries
_TARGET_BLOCK_BYTES_FRAC = 2 * 1024 * 1024   # frac path holds a/b/rolled temporaries
_SMALL_TENSOR_BYTES = 512 * 1024             # below this, XLA pad/slice wins
_MIN_GRID_STEPS = 4                          # >= 2 blocks per TensorCore on v7x
_VMEM_BUDGET_BYTES = 56 * 1024 * 1024        # below v7x's 64 MiB physical VMEM


def _sublane(itemsize):
    # sublane packing granularity per dtype width
    return {4: 8, 2: 16, 1: 32}.get(itemsize, 8)


def _plan_block_rows(nc, L, itemsize, frac_path):
    """Pick rows of the fused N*C axis per block + an explicit VMEM budget."""
    sub = _sublane(itemsize)
    if nc <= sub:
        tb = nc                                   # block equals full dim: allowed
    else:
        row_bytes = L * itemsize
        target = _TARGET_BLOCK_BYTES_FRAC if frac_path else _TARGET_BLOCK_BYTES_INT
        tb = min(max(1, target // max(1, row_bytes)), nc)
        tb = max(sub, (tb // sub) * sub)
        # Keep the grid at >= _MIN_GRID_STEPS steps so both v7x TCs get work.
        cap = (nc // _MIN_GRID_STEPS // sub) * sub
        if cap >= sub:
            tb = min(tb, cap)

    def vmem_estimate(tb_):
        blk = tb_ * L * itemsize
        blk32 = tb_ * L * 4
        temps = (6 if frac_path else 3) * blk32   # x / rolled / a / b (f32 blend)
        return 4 * blk + temps + (2 << 20)        # 2x double-buffered in + out

    while vmem_estimate(tb) > _VMEM_BUDGET_BYTES and tb > sub:
        tb = max(sub, (tb // 2 // sub) * sub)
    if vmem_estimate(tb) > _VMEM_BUDGET_BYTES:
        return None, None                         # even the minimal block won't fit
    return tb, vmem_estimate(tb)


def _masked_row_shift(x, lane, s, W, H, L):
    """Shift a (TB, H*W) block by s rows of H (= s*W lanes), zero padding.

    `lane` is a (1, L) int32 iota broadcast inside the select.
    """
    if s == 0:
        return x
    if s >= H or -s >= H:
        return jnp.zeros_like(x)
    rolled = pltpu.roll(x, (s * W) % L, axis=1)
    if s > 0:
        mask = lane >= s * W
    else:
        mask = lane < L + s * W
    return jnp.where(mask, rolled, 0).astype(x.dtype)


def _shift_kernel(x_ref, o_ref, *, s0, frac, W, H, L):
    x = x_ref[...]                                            # (TB, H*W)
    # (1, L) lane index; broadcast by jnp.where (no full-block int32 temporary).
    lane = jax.lax.broadcasted_iota(jnp.int32, (1, L), 1)

    if frac == 0.0:                                           # integer shift
        o_ref[...] = _masked_row_shift(x, lane, s0, W, H, L)
        return

    # Fractional shift: blend integer shifts s0 and s0+1; derive one from the
    # other with a single extra one-row roll instead of re-shifting x.
    if s0 >= 0:
        a = _masked_row_shift(x, lane, s0, W, H, L)
        if s0 + 1 >= H:
            b = jnp.zeros_like(x)
        else:
            b = jnp.where(lane >= (s0 + 1) * W,
                          pltpu.roll(a, W % L, axis=1), 0).astype(x.dtype)
    else:
        b = _masked_row_shift(x, lane, s0 + 1, W, H, L)       # s0 + 1 <= 0
        if -s0 >= H:
            a = jnp.zeros_like(x)
        else:
            a = jnp.where(lane < L + s0 * W,
                          pltpu.roll(b, (L - W) % L, axis=1), 0).astype(x.dtype)

    # Blend in f32 (matches the reference formula; avoids bf16 double rounding).
    a32 = a.astype(jnp.float32)
    b32 = b.astype(jnp.float32)
    o_ref[...] = ((1.0 - frac) * a32 + frac * b32).astype(o_ref.dtype)


def shift_forward(x, shift, *, force_pallas=False):
    """Pallas equivalent of Shift.forward(input, shift). x: (N, C, H, W)."""
    assert x.ndim == 4, "this method supposes the dimension of input is 4"
    shift = float(shift)
    if shift == 0.0:
        return x

    N, C, H, W = x.shape
    s0 = int(math.floor(shift))
    frac = shift - s0

    # Fully-out-of-range fast path: result is identically zero -> skip the HBM read.
    if (frac == 0.0 and abs(s0) >= H) or (frac != 0.0 and (s0 >= H or s0 + 1 <= -H)):
        return jnp.zeros_like(x)

    NC, L = N * C, H * W
    itemsize = jnp.dtype(x.dtype).itemsize

    # Tiny tensors: pallas_call launch + per-step overhead dominates.
    # Non-lane-dense H*W (L % 128 != 0): flattened stores would be masked vst.msk.
    # TODO(synk): add an H-tiled Pallas variant for L % 128 != 0 hot paths.
    if not force_pallas and (NC * L * itemsize < _SMALL_TENSOR_BYTES or L % 128 != 0):
        return _ref_shift(x, shift)

    tb, vmem_bytes = _plan_block_rows(NC, L, itemsize, frac != 0.0)
    if tb is None:
        # TODO(synk): H-tiled kernel (grid over H with a one-row halo) for rows
        # whose minimal (sublane, H*W) block exceeds the VMEM budget.
        return _ref_shift(x, shift)

    x2 = x.reshape(NC, L)
    kernel = functools.partial(_shift_kernel, s0=s0, frac=frac, W=W, H=H, L=L)
    out2 = pl.pallas_call(
        kernel,
        out_shape=jax.ShapeDtypeStruct((NC, L), x.dtype),
        grid_spec=pltpu.PrefetchScalarGridSpec(
            num_scalar_prefetch=0,
            grid=(pl.cdiv(NC, tb),),
            in_specs=[pl.BlockSpec((tb, L), lambda i: (i, 0))],
            out_specs=pl.BlockSpec((tb, L), lambda i: (i, 0)),
        ),
        compiler_params=pltpu.CompilerParams(
            dimension_semantics=("parallel",),
            vmem_limit_bytes=max(int(vmem_bytes), 16 * 1024 * 1024),
        ),
    )(x2)
    return out2.reshape(N, C, H, W)


# ------------------------- pure-jnp reference -------------------------------

def _ref_int_shift(x, s):
    H = x.shape[2]
    if s == 0:
        return x
    if abs(s) >= H:
        return jnp.zeros_like(x)
    if s > 0:
        return jnp.pad(x[:, :, : H - s, :], ((0, 0), (0, 0), (s, 0), (0, 0)))
    return jnp.pad(x[:, :, -s:, :], ((0, 0), (0, 0), (0, -s), (0, 0)))


def _ref_shift(x, shift):
    s0 = int(math.floor(float(shift)))
    frac = float(shift) - s0
    if frac == 0.0:
        return _ref_int_shift(x, s0)
    a = _ref_int_shift(x, s0).astype(jnp.float32)
    b = _ref_int_shift(x, s0 + 1).astype(jnp.float32)
    return ((1.0 - frac) * a + frac * b).astype(x.dtype)


if __name__ == "__main__":
    key = jax.random.PRNGKey(0)

    # Small NCHW input consistent with the discriminator usage (force the kernel
    # path; the wrapper would otherwise route such tiny tensors to XLA).
    x = jax.random.normal(key, (2, 4, 16, 16), dtype=jnp.float32)
    for s in [3, -2, 2.5, -1.5]:
        out = jax.block_until_ready(shift_forward(x, s, force_pallas=True))
        ref = _ref_shift(x, s)
        assert jnp.allclose(out, ref, atol=1e-6), f"shift {s} mismatch"

    # Zero shift (identity) and fully-out-of-range (all-zero) fast paths.
    assert jnp.allclose(jax.block_until_ready(shift_forward(x, 0)), x)
    assert jnp.allclose(jax.block_until_ready(shift_forward(x, 17)), jnp.zeros_like(x))
    assert jnp.allclose(jax.block_until_ready(shift_forward(x, -16.5)), jnp.zeros_like(x))

    # Small-tensor fallback path (no force): must still match.
    for s in [1.25, -3]:
        out = jax.block_until_ready(shift_forward(x, s))
        assert jnp.allclose(out, _ref_shift(x, s), atol=1e-6), f"shift {s} fallback"

    # Fused N*C axis not a multiple of the block rows (partial last block).
    x2 = jax.random.normal(jax.random.PRNGKey(1), (3, 5, 16, 16), dtype=jnp.float32)
    for s in [1.25, -3]:
        out = jax.block_until_ready(shift_forward(x2, s, force_pallas=True))
        assert jnp.allclose(out, _ref_shift(x2, s), atol=1e-6), f"shift {s} partial"

    # Moderate bf16 shape: natural kernel path, multi-step grid (megacore),
    # 16-row sublane alignment, f32 blend.
    x3 = jax.random.normal(jax.random.PRNGKey(2), (4, 32, 64, 128), dtype=jnp.bfloat16)
    for s in [5, -7, 2.75]:
        out = jax.block_until_ready(shift_forward(x3, s))
        ref = _ref_shift(x3, s)
        assert jnp.allclose(out.astype(jnp.float32), ref.astype(jnp.float32),
                            atol=2e-2), f"shift {s} bf16 mismatch"

    print("KERNEL_OK")
</pallas_src>

<mosaic_0001>
module attributes {stable_mosaic.version = 11 : i64} {
  func.func @_shift_kernel(%arg0: i32, %arg1: memref<8x256xf32, #tpu.memory_space<vmem>>, %arg2: memref<8x256xf32, #tpu.memory_space<vmem>>) attributes {dimension_semantics = [#tpu.dimension_semantics<parallel>], iteration_bounds = array<i64: 1>, scalar_prefetch = 0 : i64, scratch_operands = 0 : i64, tpu.core_type = #tpu.core_type<tc>, window_params = [{transform_indices = @transform_0, window_bounds = array<i64: 8, 256>}, {transform_indices = @transform_1, window_bounds = array<i64: 8, 256>}]} {
    %c0 = arith.constant 0 : index
    %c0_0 = arith.constant 0 : index
    %0 = vector.load %arg1[%c0, %c0_0] : memref<8x256xf32, #tpu.memory_space<vmem>>, vector<8x256xf32>
    %1 = tpu.iota {dimensions = array<i32: 1>} : vector<1x256xi32>
    %c48_i32 = arith.constant 48 : i32
    %2 = tpu.dynamic_rotate %0 by %c48_i32 dim 1 : vector<8x256xf32>, i32 -> vector<8x256xf32>
    %c48_i32_1 = arith.constant 48 : i32
    %3 = vector.broadcast %c48_i32_1 : i32 to vector<1x256xi32>
    %4 = arith.cmpi sge, %1, %3 : vector<1x256xi32>
    %c0_i32 = arith.constant 0 : i32
    %5 = arith.sitofp %c0_i32 : i32 to f32
    %6 = vector.shape_cast %4 : vector<1x256xi1> to vector<1x256xi1>
    %7 = vector.broadcast %6 : vector<1x256xi1> to vector<8x256xi1>
    %8 = vector.broadcast %5 : f32 to vector<8x256xf32>
    %9 = arith.select %7, %2, %8 : vector<8x256xi1>, vector<8x256xf32>
    %c0_2 = arith.constant 0 : index
    %c0_3 = arith.constant 0 : index
    %10 = vector.load %arg2[%c0_2, %c0_3] : memref<8x256xf32, #tpu.memory_space<vmem>>, vector<8x256xf32>
    tpu.vector_store %arg2[%c0_2, %c0_3], %9 {strides = array<i32>} : memref<8x256xf32, #tpu.memory_space<vmem>>, vector<8x256xf32>,
    return
  }
  func.func @transform_0(%arg0: i32) -> (i32, i32) {
    %c0_i32 = arith.constant 0 : i32
    %c0_i32_0 = arith.constant 0 : i32
    return %arg0, %c0_i32 : i32, i32
  }
  func.func @transform_1(%arg0: i32) -> (i32, i32) {
    %c0_i32 = arith.constant 0 : i32
    %c0_i32_0 = arith.constant 0 : i32
    return %arg0, %c0_i32 : i32, i32
  }
}

</mosaic_0001>

<bundles_post_ra>
// kernel: tpu_custom_call.1
= control target key start
LH: loop header
LB: loop body
LE: loop exit
PB: predicated region body
PF: predicated region fallthrough
CT: control target
= control target key end

     0   :  { %6 = vsyncpa [#allocation3], 0  ;;  %s124_s0 = inlined_call_operand.hbm [shape: f32[8,256], index: 0, kind: input, shape index: {}]   ;;  %s125_s1 = inlined_call_operand.hbm [shape: f32[8,256], index: 1, kind: output, shape index: {}]  }
   0x1   :  { %7 = vsyncpa [#allocation4], 0  ;;  %s105_s6 = smov [#allocation2]  }
   0x2   :  { %s14_s7 = sshll.u32 %s105_s6, 4  ;;  %s15_s7 = int_to_ptr.vmem [resolvable:$true] %s14_s7 }
   0x3   :  { %s69_s8 = scalar_lea.vmem %s15_s7, 256  ;;  %p74_p1 = scmp.lt.s32.totalorder %s15_s7, %s15_s7 }
   0x4   :  { %p70_p0 = scmp.ne.s32.totalorder %s15_s7, %s69_s8  ;;  %p75_p2 = scmp.lt.s32.totalorder %s69_s8, %s69_s8 }
   0x6   :  { %p76_p3 = por %p75_p2, %p74_p1 }
   0x8   :  { %p77_p4 = pnand %p76_p3, %p70_p0 }
   0xa   :  { %80 = shalt.err (!%p77_p4)
}
   0xb   :  { %17 = dma.hbm_to_vmem [thread:$0]  %s124_s0, 256, %s15_s7, [#allocation3]  }
   0xc   :  { %101 = dma.done.wait [#allocation3], 256  }
   0xd   :  { %102 = vsyncadd [#allocation3], 4294967040  ;;  %v21_v0 = vld [vmem:[#allocation2] sm:$0xff]  ;;  %s106_s11 = smov 48   ;;  %v22_v1 = vld [vmem:[#allocation2 + $0x8] sm:$0xff]  ;;  %v23_v2 = vlaneseq  ;;  %s107_s12 = smov [#allocation5]  }
   0xe   :  { %26 = vrot.lane.b32.xlu0 %v21_v0, %s106_s11  ;;  %s49_s13 = sshll.u32 %s107_s12, 4  ;;  %s50_s13 = int_to_ptr.vmem [resolvable:$true] %s49_s13 }
   0xf   :  { %v24_v3 = vand.u32 127, %v23_v2  ;;  %s81_s0 = scalar_lea.vmem %s50_s13, 256  ;;  %p86_p6 = scmp.lt.s32.totalorder %s50_s13, %s50_s13 }
  0x10   :  { %p82_p5 = scmp.ne.s32.totalorder %s50_s13, %s81_s0  ;;  %p87_p7 = scmp.lt.s32.totalorder %s81_s0, %s81_s0 }
  0x11   :  { %vm30_vm0 = vcmp.lt.s32.totalorder %v24_v3, 48  ;;  %vm33_vm1 = vcmp.ge.s32.totalorder %v24_v3, 48 }
  0x12   :  { %28 = vrot.lane.b32.xlu0 %v22_v1, %s106_s11  ;;  %p88_p8 = por %p87_p7, %p86_p6 }
  0x14   :  { %p89_p9 = pnand %p88_p8, %p82_p5 }
  0x80   :  { %v27_v4 = vpop.permute.xlu0 %26 }
  0x84   :  { %v29_v5 = vpop.permute.xlu0 %28 }
  0x85   :  { %v31_v6 = vsel %vm30_vm0, %v27_v4, %v29_v5  ;;  %v32_v7 = vsel %vm30_vm0, %v29_v5, %v27_v4 }
  0x86   :  { %v39_v8 = vsel %vm33_vm1, %v32_v7, 0.0  ;;  %42 = vst [vmem:[#allocation5 + $0x8] sm:$0xff] %v31_v6 }
  0x87   :  { %41 = vst [vmem:[#allocation5] sm:$0xff] %v39_v8 }
  0x88   :  { %92 = shalt.err (!%p89_p9)
}
  0x89   :  { %52 = dma.vmem_to_hbm [thread:$0]  %s50_s13, 256, %s125_s1, [#allocation4]  }
  0x8a   :  { %103 = dma.done.wait [#allocation4], 256  }
  0x8b   :  { %104 = vsyncadd [#allocation4], 4294967040 }
  0x8c   :  { %56 = vsyncpa [#allocation3], 1 }
  0x8d   :  { %57 = vsyncpa [#allocation4], 1 }

</bundles_post_ra>
